<compile_context>
chip_gen: v7x
topology: tpu7x:2x2x1
jax: 0.10.0
libtpu: 0.0.40
codegen_flags: <defaults>
</compile_context>

<pallas_src>
import jax
import jax.numpy as jnp
from jax import lax
from jax.experimental import pallas as pl
from jax.experimental.pallas import tpu as pltpu

LANE = 128
SUBLANE = 8
CHUNK_ROWS = 128          # per-chunk compute tile: (128,128) f32 = 16 vregs per operand


def _cdiv(a, b):
    return -(-a // b)


def _round_up(a, b):
    return _cdiv(a, b) * b


def _device_defaults():
    """(max_block_rows, num_shards, use_core_parallel) per TPU generation."""
    try:
        kind = jax.devices()[0].device_kind.lower()
    except Exception:
        kind = ""
    if "v7" in kind:
        # 2 TensorCores/chip, 64 MiB VMEM/TC, ~3.2 TB/s HBM: big blocks + real core split.
        return 8192, 2, True
    if "v6" in kind:
        # 128 MiB VMEM, 32 MiB scoped default: 4 MiB/input/buffer is comfortable.
        return 8192, 1, False
    if "v5" in kind:
        # v5e default scoped VMEM is 16 MiB: keep the input pipeline buffers at 8 MiB.
        return 4096, 1, False
    # Unknown / older chip: conservative.
    return 2048, 1, False


def _chunk_terms(yp_raw, yt_raw):
    yp = yp_raw.astype(jnp.float32)
    yt = yt_raw.astype(jnp.float32)
    d = yp - yt
    ad = jnp.abs(d)
    q = jnp.minimum(ad, 1.0)                 # branchless Huber, delta = 1.0
    huber = q * (ad - 0.5 * q)               # 0.5*d^2 if |d| < 1 else |d| - 0.5
    smooth = jnp.abs(yp - jnp.round(yp))     # round-half-to-even == torch.round
    return huber, smooth


def _fold(x):
    # (c_rows, 128) -> (8, 128): vreg-aligned partial sums, pure VPU adds (no XLU).
    return x.reshape(-1, SUBLANE, LANE).sum(axis=0)


def _make_energy_loss_kernel(block_rows, chunk_rows, valid_rows, num_blocks,
                             blocks_per_shard, needs_tail_mask):
    """All tiling facts are compile-time constants baked into the kernel."""
    last_real = num_blocks - 1
    tail_limit = valid_rows - last_real * block_rows      # valid rows in last real block

    # Chunk schedule for a full (interior) block.
    n_full_chunks = block_rows // chunk_rows
    rem_rows = block_rows - n_full_chunks * chunk_rows    # static remainder, multiple of 8

    # Chunk schedule for the (possibly partial) tail block.
    t_full_chunks = tail_limit // chunk_rows
    t_start = t_full_chunks * chunk_rows
    t_valid = tail_limit - t_start                        # 0 <= t_valid < chunk_rows
    t_masked_rows = min(chunk_rows, block_rows - t_start) if t_valid > 0 else 0

    def _accumulate(yp_ref, yt_ref, hacc_ref, sacc_ref, n_chunks, tail_rows, tail_valid):
        """Accumulate n_chunks full chunks plus one optional static tail chunk."""
        def body(c, carry):
            h_acc, s_acc = carry
            r0 = pl.multiple_of(c * chunk_rows, SUBLANE)
            h, s = _chunk_terms(yp_ref[pl.ds(r0, chunk_rows), :],
                                yt_ref[pl.ds(r0, chunk_rows), :])
            return h_acc + _fold(h), s_acc + _fold(s)

        zeros = jnp.zeros((SUBLANE, LANE), jnp.float32)
        if n_chunks > 0:
            h_acc, s_acc = lax.fori_loop(0, n_chunks, body, (zeros, zeros),
                                         unroll=min(2, n_chunks))
        else:
            h_acc, s_acc = zeros, zeros

        if tail_rows > 0:
            r0 = n_chunks * chunk_rows                    # static, sublane-aligned
            h, s = _chunk_terms(yp_ref[pl.ds(r0, tail_rows), :],
                                yt_ref[pl.ds(r0, tail_rows), :])
            if tail_valid is not None and tail_valid < tail_rows:
                # where-select (not multiply) so OOB garbage (NaN/Inf) cannot leak in.
                ridx = lax.broadcasted_iota(jnp.int32, (tail_rows, LANE), 0)
                keep = ridx < tail_valid
                h = jnp.where(keep, h, 0.0)
                s = jnp.where(keep, s, 0.0)
            h_acc = h_acc + _fold(h)
            s_acc = s_acc + _fold(s)

        hacc_ref[...] += h_acc
        sacc_ref[...] += s_acc

    def kernel(yp_ref, yt_ref, hacc_ref, sacc_ref):
        s_id = pl.program_id(0)   # shard axis (core-parallel on v7x)
        t_id = pl.program_id(1)   # tile within shard (reduction axis)

        @pl.when(t_id == 0)
        def _():
            hacc_ref[...] = jnp.zeros_like(hacc_ref)
            sacc_ref[...] = jnp.zeros_like(sacc_ref)

        if not needs_tail_mask:
            _accumulate(yp_ref, yt_ref, hacc_ref, sacc_ref,
                        n_full_chunks, rem_rows, None)
        else:
            gblock = s_id * blocks_per_shard + t_id

            @pl.when(gblock < last_real)          # full interior block: no mask cost
            def _():
                _accumulate(yp_ref, yt_ref, hacc_ref, sacc_ref,
                            n_full_chunks, rem_rows, None)

            @pl.when(gblock == last_real)         # (possibly) partial tail block
            def _():
                _accumulate(yp_ref, yt_ref, hacc_ref, sacc_ref,
                            t_full_chunks, t_masked_rows, t_valid)
            # gblock > last_real: over-issued block (index_map clamps its DMA onto the
            # last real block so it stays in bounds); contributes nothing.

    return kernel


def custom_energy_loss(y_pred, y_true):
    """Matches CustomEnergyLoss.forward:
         base   = mean(huber(y_pred, y_true, delta=1.0))
         smooth = mean(|y_pred - round(y_pred)|)
         total  = base + 0.001 * smooth
    Returns (total_loss, stats) with stats as JAX scalars (jit-friendly)."""
    assert y_pred.shape == y_true.shape
    n = int(y_pred.size)

    max_block_rows, want_shards, core_parallel = _device_defaults()

    flat_p = y_pred.reshape(-1)
    flat_t = y_true.reshape(-1)

    rows = _cdiv(n, LANE)
    if rows <= max_block_rows:
        # Single-block case: round rows to a sublane multiple so chunk folds stay
        # vreg-aligned.
        rows = _round_up(rows, SUBLANE)

    padded_len = rows * LANE
    if padded_len != n:
        # Zero pad (zeros contribute 0 to both sums).  Only triggers for tiny or
        # non-lane-aligned inputs; typical training tensors (n % 128 == 0) take the
        # copy-free reshape path.
        # TODO(synk): for very large non-128-aligned inputs this pad is an extra full
        # HBM round-trip; a flat-layout kernel with an in-kernel element mask would
        # avoid it.
        flat_p = jnp.pad(flat_p, (0, padded_len - n))
        flat_t = jnp.pad(flat_t, (0, padded_len - n))

    xp = flat_p.reshape(rows, LANE)   # free reshape: same row-major layout
    xt = flat_t.reshape(rows, LANE)

    block_rows = min(max_block_rows, rows)
    chunk_rows = min(CHUNK_ROWS, block_rows)
    num_blocks = _cdiv(rows, block_rows)
    num_shards = want_shards if num_blocks >= want_shards else 1
    blocks_per_shard = _cdiv(num_blocks, num_shards)
    over_issue = num_shards * blocks_per_shard > num_blocks
    partial_tail = (rows % block_rows) != 0
    needs_tail_mask = over_issue or partial_tail

    kernel = _make_energy_loss_kernel(block_rows, chunk_rows, rows, num_blocks,
                                      blocks_per_shard, needs_tail_mask)

    if over_issue:
        def in_map(s, t):
            # Clamp over-issued tail blocks onto the last real block so their DMA stays
            # in bounds; the kernel skips their contribution.
            return (jnp.minimum(s * blocks_per_shard + t, num_blocks - 1), 0)
    else:
        def in_map(s, t):
            return (s * blocks_per_shard + t, 0)

    in_spec = pl.BlockSpec((block_rows, LANE), in_map)
    # TODO(synk): on v7x, sweep pipeline_mode=pl.Buffered(3) on the input specs if a
    # trace shows exposed DMA waits at block boundaries.
    out_spec = pl.BlockSpec((SUBLANE, LANE), lambda s, t: (s, 0))
    part_shape = jax.ShapeDtypeStruct((num_shards * SUBLANE, LANE), jnp.float32)

    itemsize = max(jnp.dtype(y_pred.dtype).itemsize, jnp.dtype(y_true.dtype).itemsize)
    # 2 inputs x 2 pipeline buffers x one block, plus headroom for outputs/temporaries.
    vmem_limit = min(4 * block_rows * LANE * itemsize + (8 << 20), 96 << 20)

    if num_shards > 1 and core_parallel:
        # Force a real split across the two v7x TensorCores (plain "parallel" may not).
        dim_sem = (pltpu.CORE_PARALLEL, pltpu.ARBITRARY)
    else:
        dim_sem = ("parallel", "arbitrary")

    cost = pl.CostEstimate(
        flops=12 * n,
        transcendentals=0,
        bytes_accessed=2 * n * itemsize + 2 * num_shards * SUBLANE * LANE * 4,
    )

    h_parts, s_parts = pl.pallas_call(
        kernel,
        out_shape=(part_shape, part_shape),
        grid_spec=pltpu.PrefetchScalarGridSpec(
            num_scalar_prefetch=0,
            grid=(num_shards, blocks_per_shard),
            in_specs=[in_spec, in_spec],
            out_specs=[out_spec, out_spec],
        ),
        compiler_params=pltpu.CompilerParams(
            dimension_semantics=dim_sem,
            vmem_limit_bytes=int(vmem_limit),
        ),
        cost_estimate=cost,
    )(xp, xt)

    # Final tiny reduce of the lane-dense partials + mean normalization.
    base_loss = jnp.sum(h_parts) / n
    smoothness_loss = jnp.sum(s_parts) / n
    total_loss = base_loss + 0.001 * smoothness_loss

    # TODO(synk): PyTorch returns .item() floats in the stats dict; we return JAX
    # scalars to avoid a device->host sync per call.
    stats = {
        "base_loss": base_loss,
        "smoothness_loss": smoothness_loss,
        "total_loss": total_loss,
    }
    return total_loss, stats


def _reference(y_pred, y_true):
    yp = y_pred.astype(jnp.float32)
    yt = y_true.astype(jnp.float32)
    d = yp - yt
    ad = jnp.abs(d)
    huber = jnp.where(ad < 1.0, 0.5 * d * d, ad - 0.5)
    base = jnp.mean(huber)
    smooth = jnp.mean(jnp.abs(yp - jnp.round(yp)))
    return base + 0.001 * smooth


if __name__ == "__main__":
    key = jax.random.PRNGKey(0)
    kp, kt = jax.random.split(key)
    # Small shapes consistent with an NCHW prediction map.
    shape = (2, 4, 16, 16)
    y_pred = jax.random.normal(kp, shape, dtype=jnp.float32) * 3.0
    y_true = jax.random.normal(kt, shape, dtype=jnp.float32) * 3.0

    total, stats = custom_energy_loss(y_pred, y_true)
    total = jax.block_until_ready(total)

    ref = jax.block_until_ready(_reference(y_pred, y_true))
    tol = 1e-5 * max(1.0, abs(float(ref)))
    assert abs(float(total) - float(ref)) < tol, (float(total), float(ref))

    print("KERNEL_OK")
</pallas_src>

<mosaic_0001>
module attributes {stable_mosaic.version = 11 : i64} {
  func.func @kernel(%arg0: i32, %arg1: i32, %arg2: memref<16x128xf32, #tpu.memory_space<vmem>>, %arg3: memref<16x128xf32, #tpu.memory_space<vmem>>, %arg4: memref<8x128xf32, #tpu.memory_space<vmem>>, %arg5: memref<8x128xf32, #tpu.memory_space<vmem>>) attributes {dimension_semantics = [#tpu.dimension_semantics<parallel>, #tpu.dimension_semantics<arbitrary>], iteration_bounds = array<i64: 1, 1>, scalar_prefetch = 0 : i64, scratch_operands = 0 : i64, tpu.core_type = #tpu.core_type<tc>, window_params = [{transform_indices = @transform_0, window_bounds = array<i64: 16, 128>}, {transform_indices = @transform_1, window_bounds = array<i64: 16, 128>}, {transform_indices = @transform_2, window_bounds = array<i64: 8, 128>}, {transform_indices = @transform_3, window_bounds = array<i64: 8, 128>}]} {
    %c0_i32 = arith.constant 0 : i32
    %0 = arith.cmpi eq, %arg1, %c0_i32 : i32
    %1 = arith.extui %0 : i1 to i32
    %c0_i32_0 = arith.constant 0 : i32
    %2 = arith.cmpi ne, %1, %c0_i32_0 : i32
    scf.if %2 {
      %cst_15 = arith.constant 0.000000e+00 : f32
      %33 = vector.broadcast %cst_15 : f32 to vector<8x128xf32>
      %c0_16 = arith.constant 0 : index
      %c0_17 = arith.constant 0 : index
      %34 = vector.load %arg4[%c0_16, %c0_17] : memref<8x128xf32, #tpu.memory_space<vmem>>, vector<8x128xf32>
      tpu.vector_store %arg4[%c0_16, %c0_17], %33 {strides = array<i32>} : memref<8x128xf32, #tpu.memory_space<vmem>>, vector<8x128xf32>,
      %cst_18 = arith.constant 0.000000e+00 : f32
      %35 = vector.broadcast %cst_18 : f32 to vector<8x128xf32>
      %c0_19 = arith.constant 0 : index
      %c0_20 = arith.constant 0 : index
      %36 = vector.load %arg5[%c0_19, %c0_20] : memref<8x128xf32, #tpu.memory_space<vmem>>, vector<8x128xf32>
      tpu.vector_store %arg5[%c0_19, %c0_20], %35 {strides = array<i32>} : memref<8x128xf32, #tpu.memory_space<vmem>>, vector<8x128xf32>,
    } else {
    }
    %cst = arith.constant 0.000000e+00 : f32
    %3 = vector.broadcast %cst : f32 to vector<8x128xf32>
    %c0_i32_1 = arith.constant 0 : i32
    %c16_i32 = arith.constant 16 : i32
    %4 = arith.muli %c0_i32_1, %c16_i32 : i32
    %5 = tpu.assume_multiple %4, 8 : i32
    %6 = arith.index_cast %5 : i32 to index
    %c0 = arith.constant 0 : index
    %7 = vector.load %arg2[%6, %c0] : memref<16x128xf32, #tpu.memory_space<vmem>>, vector<16x128xf32>
    %8 = arith.index_cast %5 : i32 to index
    %c0_2 = arith.constant 0 : index
    %9 = vector.load %arg3[%8, %c0_2] : memref<16x128xf32, #tpu.memory_space<vmem>>, vector<16x128xf32>
    %10 = arith.subf %7, %9 : vector<16x128xf32>
    %11 = math.absf %10 : vector<16x128xf32>
    %cst_3 = arith.constant 1.000000e+00 : f32
    %12 = vector.broadcast %cst_3 : f32 to vector<16x128xf32>
    %13 = arith.minimumf %11, %12 : vector<16x128xf32>
    %cst_4 = arith.constant 5.000000e-01 : f32
    %14 = vector.broadcast %cst_4 : f32 to vector<16x128xf32>
    %15 = arith.mulf %14, %13 : vector<16x128xf32>
    %16 = arith.subf %11, %15 : vector<16x128xf32>
    %17 = arith.mulf %13, %16 : vector<16x128xf32>
    %18 = math.roundeven %7 : vector<16x128xf32>
    %19 = arith.subf %7, %18 : vector<16x128xf32>
    %20 = math.absf %19 : vector<16x128xf32>
    %21 = vector.shape_cast %17 : vector<16x128xf32> to vector<2x8x128xf32>
    %cst_5 = arith.constant dense<0.000000e+00> : vector<8x128xf32>
    %22 = vector.multi_reduction <add>, %21, %cst_5 [0] : vector<2x8x128xf32> to vector<8x128xf32>
    %23 = arith.addf %3, %22 : vector<8x128xf32>
    %24 = vector.shape_cast %20 : vector<16x128xf32> to vector<2x8x128xf32>
    %cst_6 = arith.constant dense<0.000000e+00> : vector<8x128xf32>
    %25 = vector.multi_reduction <add>, %24, %cst_6 [0] : vector<2x8x128xf32> to vector<8x128xf32>
    %26 = arith.addf %3, %25 : vector<8x128xf32>
    %c1_i32 = arith.constant 1 : i32
    %c0_7 = arith.constant 0 : index
    %c0_8 = arith.constant 0 : index
    %27 = vector.load %arg4[%c0_7, %c0_8] : memref<8x128xf32, #tpu.memory_space<vmem>>, vector<8x128xf32>
    %28 = arith.addf %27, %23 : vector<8x128xf32>
    %c0_9 = arith.constant 0 : index
    %c0_10 = arith.constant 0 : index
    %29 = vector.load %arg4[%c0_9, %c0_10] : memref<8x128xf32, #tpu.memory_space<vmem>>, vector<8x128xf32>
    tpu.vector_store %arg4[%c0_9, %c0_10], %28 {strides = array<i32>} : memref<8x128xf32, #tpu.memory_space<vmem>>, vector<8x128xf32>,
    %c0_11 = arith.constant 0 : index
    %c0_12 = arith.constant 0 : index
    %30 = vector.load %arg5[%c0_11, %c0_12] : memref<8x128xf32, #tpu.memory_space<vmem>>, vector<8x128xf32>
    %31 = arith.addf %30, %26 : vector<8x128xf32>
    %c0_13 = arith.constant 0 : index
    %c0_14 = arith.constant 0 : index
    %32 = vector.load %arg5[%c0_13, %c0_14] : memref<8x128xf32, #tpu.memory_space<vmem>>, vector<8x128xf32>
    tpu.vector_store %arg5[%c0_13, %c0_14], %31 {strides = array<i32>} : memref<8x128xf32, #tpu.memory_space<vmem>>, vector<8x128xf32>,
    return
  }
  func.func @transform_0(%arg0: i32, %arg1: i32) -> (i32, i32) {
    %c1_i32 = arith.constant 1 : i32
    %0 = arith.muli %arg0, %c1_i32 : i32
    %1 = arith.addi %0, %arg1 : i32
    %c0_i32 = arith.constant 0 : i32
    %c0_i32_0 = arith.constant 0 : i32
    return %1, %c0_i32 : i32, i32
  }
  func.func @transform_1(%arg0: i32, %arg1: i32) -> (i32, i32) {
    %c1_i32 = arith.constant 1 : i32
    %0 = arith.muli %arg0, %c1_i32 : i32
    %1 = arith.addi %0, %arg1 : i32
    %c0_i32 = arith.constant 0 : i32
    %c0_i32_0 = arith.constant 0 : i32
    return %1, %c0_i32 : i32, i32
  }
  func.func @transform_2(%arg0: i32, %arg1: i32) -> (i32, i32) {
    %c0_i32 = arith.constant 0 : i32
    %c0_i32_0 = arith.constant 0 : i32
    return %arg0, %c0_i32 : i32, i32
  }
  func.func @transform_3(%arg0: i32, %arg1: i32) -> (i32, i32) {
    %c0_i32 = arith.constant 0 : i32
    %c0_i32_0 = arith.constant 0 : i32
    return %arg0, %c0_i32 : i32, i32
  }
}

</mosaic_0001>

<bundles_post_ra>
// kernel: tpu_custom_call.1
= control target key start
LH: loop header
LB: loop body
LE: loop exit
PB: predicated region body
PF: predicated region fallthrough
CT: control target
= control target key end

     0   :  { %9 = vsyncpa [#allocation3], 0  ;;  %s302_s0 = inlined_call_operand.hbm [shape: f32[16,128], index: 0, kind: input, shape index: {}]   ;;  %s303_s1 = inlined_call_operand.hbm [shape: f32[16,128], index: 1, kind: input, shape index: {}]   ;;  %s304_s2 = inlined_call_operand.hbm [shape: f32[8,128], index: 2, kind: output, shape index: {0}]   ;;  %s305_s3 = inlined_call_operand.hbm [shape: f32[8,128], index: 3, kind: output, shape index: {1}]  }
   0x1   :  { %10 = vsyncpa [#allocation6], 0 }
   0x2   :  { %11 = vsyncpa [#allocation4], 0 }
   0x3   :  { %12 = vsyncpa [#allocation9], 0  ;;  %s228_s12 = smov [#allocation2]   ;;  %s132_s16 = scalar_lea.hbm %s302_s0, 256 }
   0x4   :  { %s22_s13 = sshll.u32 %s228_s12, 4  ;;  %p133_p0 = scmp.ne.s32.totalorder %s302_s0, %s132_s16  ;;  %s23_s13 = int_to_ptr.vmem [resolvable:$true] %s22_s13 }
   0x5   :  { %p136_p1 = scmp.lt.u32.totalorder %s132_s16, %s302_s0 }
   0x7   :  { %p138_p2 = pnand %p136_p1, %p133_p0 }
   0x9   :  { %141 = shalt.err (!%p138_p2)
}
   0xa   :  { %s142_s21 = scalar_lea.vmem %s23_s13, 256  ;;  %p147_p4 = scmp.lt.s32.totalorder %s23_s13, %s23_s13 }
   0xb   :  { %p143_p3 = scmp.ne.s32.totalorder %s23_s13, %s142_s21  ;;  %p148_p5 = scmp.lt.s32.totalorder %s142_s21, %s142_s21 }
   0xd   :  { %p149_p6 = por %p148_p5, %p147_p4 }
   0xf   :  { %p150_p7 = pnand %p149_p6, %p143_p3 }
  0x11   :  { %153 = shalt.err (!%p150_p7)
}
  0x12   :  { %s229_s22 = smov 128   ;;  %s230_s23 = smov 8  }
  0x13   :  { %28 = dma.hbm_to_vmem [thread:$0]  %s302_s0, 256, %s23_s13, [#allocation3], %s229_s22, %s229_s22, %s230_s23  }
  0x14   :  { %s231_s26 = smov [#allocation5]   ;;  %s154_s30 = scalar_lea.hbm %s303_s1, 256 }
  0x15   :  { %s38_s27 = sshll.u32 %s231_s26, 4  ;;  %p155_p8 = scmp.ne.s32.totalorder %s303_s1, %s154_s30  ;;  %s39_s27 = int_to_ptr.vmem [resolvable:$true] %s38_s27 }
  0x16   :  { %p158_p9 = scmp.lt.u32.totalorder %s154_s30, %s303_s1 }
  0x18   :  { %p160_p10 = pnand %p158_p9, %p155_p8 }
  0x1a   :  { %163 = shalt.err (!%p160_p10)
}
  0x1b   :  { %s164_s8 = scalar_lea.vmem %s39_s27, 256  ;;  %p169_p12 = scmp.lt.s32.totalorder %s39_s27, %s39_s27 }
  0x1c   :  { %p165_p11 = scmp.ne.s32.totalorder %s39_s27, %s164_s8  ;;  %p170_p13 = scmp.lt.s32.totalorder %s164_s8, %s164_s8 }
  0x1e   :  { %p171_p0 = por %p170_p13, %p169_p12 }
  0x20   :  { %p172_p1 = pnand %p171_p0, %p165_p11 }
  0x22   :  { %175 = shalt.err (!%p172_p1)
}
  0x23   :  { %44 = dma.hbm_to_vmem [thread:$0]  %s303_s1, 256, %s39_s27, [#allocation6], %s229_s22, %s229_s22, %s230_s23  }
  0x24   :  { %220 = dma.done.wait [#allocation3], 256  }
  0x25   :  { %221 = vsyncadd [#allocation3], 4294967040 }
  0x26   :  { %222 = dma.done.wait [#allocation6], 256  }
  0x27   :  { %223 = vsyncadd [#allocation6], 4294967040  ;;  %v61_v0 = vld [vmem:[#allocation2] sm:$0xff]  ;;  %v62_v1 = vld [vmem:[#allocation2 + $0x8] sm:$0xff]  ;;  %s232_s1 = smov [#allocation8]  }
  0x28   :  { %v63_v2 = vld [vmem:[#allocation5] sm:$0xff]  ;;  %v64_v3 = vld [vmem:[#allocation5 + $0x8] sm:$0xff]  ;;  %v123_v5 = vround.rtne.f32 %v61_v0  ;;  %v124_v6 = vround.rtne.f32 %v62_v1  ;;  %s109_s10 = sshll.u32 %s232_s1, 4  ;;  %s110_s10 = int_to_ptr.vmem [resolvable:$true] %s109_s10 }
  0x29   :  { %v65_v4 = vsub.f32 %v61_v0, %v63_v2  ;;  %v66_v7 = vsub.f32 %v62_v1, %v64_v3  ;;  %s176_s11 = scalar_lea.vmem %s110_s10, 128  ;;  %p181_p3 = scmp.lt.s32.totalorder %s110_s10, %s110_s10 }
  0x2a   :  { %v79_v9 = vsub.f32 %v61_v0, %v123_v5  ;;  %v80_v10 = vsub.f32 %v62_v1, %v124_v6  ;;  %p177_p2 = scmp.ne.s32.totalorder %s110_s10, %s176_s11  ;;  %p182_p4 = scmp.lt.s32.totalorder %s176_s11, %s176_s11 }
  0x2b   :  { %v67_v8 = vand.u32 2147483647, %v65_v4  ;;  %v68_v11 = vand.u32 2147483647, %v66_v7 }
  0x2c   :  { %v81_v13 = vand.u32 2147483647, %v79_v9  ;;  %v82_v14 = vand.u32 2147483647, %v80_v10  ;;  %p183_p5 = por %p182_p4, %p181_p3 }
  0x2d   :  { %v69_v12 = vmin.f32 %v67_v8, 1.0  ;;  %v70_v15 = vmin.f32 %v68_v11, 1.0 }
  0x2e   :  { %v85_v17 = vadd.f32 %v82_v14, %v81_v13  ;;  %p184_p6 = pnand %p183_p5, %p177_p2 }
  0x2f   :  { %v71_v16 = vmul.f32 0.5, %v69_v12  ;;  %v72_v18 = vmul.f32 0.5, %v70_v15 }
  0x30   :  { %92 = vst [vmem:[#allocation8] sm:$0xff] %v85_v17 }
  0x31   :  { %v73_v19 = vsub.f32 %v67_v8, %v71_v16  ;;  %v74_v20 = vsub.f32 %v68_v11, %v72_v18 }
  0x33   :  { %v75_v21 = vmul.f32 %v73_v19, %v69_v12  ;;  %v76_v22 = vmul.f32 %v74_v20, %v70_v15 }
  0x34   :  { %187 = shalt.err (!%p184_p6)
}
  0x35   :  { %s188_s14 = scalar_lea.hbm %s305_s3, 128 }
  0x36   :  { %p189_p7 = scmp.ne.s32.totalorder %s305_s3, %s188_s14  ;;  %p192_p8 = scmp.lt.u32.totalorder %s188_s14, %s305_s3 }
  0x38   :  { %p194_p9 = pnand %p192_p8, %p189_p7 }
  0x3a   :  { %197 = shalt.err (!%p194_p9)
}
  0x3b   :  { %112 = dma.vmem_to_hbm [thread:$0]  %s110_s10, 128, %s305_s3, [#allocation9]   ;;  %v83_v23 = vadd.f32 %v76_v22, %v75_v21 }
  0x3c   :  { %s233_s21 = smov [#allocation7]  }
  0x3d   :  { %s99_s22 = sshll.u32 %s233_s21, 4  ;;  %89 = vst [vmem:[#allocation7] sm:$0xff] %v83_v23  ;;  %s100_s22 = int_to_ptr.vmem [resolvable:$true] %s99_s22 }
  0x3e   :  { %s198_s23 = scalar_lea.vmem %s100_s22, 128  ;;  %p203_p11 = scmp.lt.s32.totalorder %s100_s22, %s100_s22 }
  0x3f   :  { %p199_p10 = scmp.ne.s32.totalorder %s100_s22, %s198_s23  ;;  %p204_p12 = scmp.lt.s32.totalorder %s198_s23, %s198_s23 }
  0x41   :  { %p205_p13 = por %p204_p12, %p203_p11 }
  0x43   :  { %p206_p0 = pnand %p205_p13, %p199_p10 }
  0x45   :  { %209 = shalt.err (!%p206_p0)
}
  0x46   :  { %s210_s26 = scalar_lea.hbm %s304_s2, 128 }
  0x47   :  { %p211_p1 = scmp.ne.s32.totalorder %s304_s2, %s210_s26  ;;  %p214_p2 = scmp.lt.u32.totalorder %s210_s26, %s304_s2 }
  0x49   :  { %p216_p3 = pnand %p214_p2, %p211_p1 }
  0x4b   :  { %219 = shalt.err (!%p216_p3)
}
  0x4c   :  { %102 = dma.vmem_to_hbm [thread:$0]  %s100_s22, 128, %s304_s2, [#allocation4]  }
  0x4d   :  { %224 = dma.done.wait [#allocation4], 128  }
  0x4e   :  { %225 = vsyncadd [#allocation4], 4294967168 }
  0x4f   :  { %226 = dma.done.wait [#allocation9], 128  }
  0x50   :  { %227 = vsyncadd [#allocation9], 4294967168 }
  0x51   :  { %119 = vsyncpa [#allocation3], 1 }
  0x52   :  { %120 = vsyncpa [#allocation6], 1 }
  0x53   :  { %121 = vsyncpa [#allocation4], 1 }
  0x54   :  { %122 = vsyncpa [#allocation9], 1 }

</bundles_post_ra>
